<compile_context>
chip_gen: v7x
topology: tpu7x:2x2x1
jax: 0.10.0
libtpu: 0.0.40
codegen_flags: <defaults>
</compile_context>

<pallas_src>
import jax
import jax.numpy as jnp
from jax.experimental import pallas as pl
from jax.experimental.pallas import tpu as pltpu

LANE = 128


def _round_up(n, m):
    return ((n + m - 1) // m) * m


def _cores_per_chip():
    """2 TensorCores per chip on v7x, 1 on v5e/v6e (best-effort detection)."""
    try:
        kind = jax.devices()[0].device_kind.lower()
    except Exception:
        return 1
    return 2 if ("v7" in kind or "7x" in kind) else 1


def _vmem_capacity_bytes():
    try:
        return int(pltpu.get_tpu_info().vmem_capacity_bytes)
    except Exception:
        return 64 * 1024 * 1024  # conservative fallback (v7x per-core VMEM)


def value_net_kernel(x_ref,
                     w1_ref, b1_ref,
                     w2_ref, b2_ref,
                     w3_ref, b3_ref,
                     w4_ref, b4_ref,
                     o_ref):
    """Fused 4-layer MLP on one batch tile.

    Matmuls run at the weights' dtype (bf16 fast path) with f32 accumulation on
    the MXU; bias-add and ReLU stay in f32 on the VPU.  The f32 -> matmul-dtype
    cast of x happens here (not in the wrapper) so x only crosses HBM once.
    """
    w_dtype = w1_ref.dtype
    x = x_ref[...].astype(w_dtype)
    h = jnp.dot(x, w1_ref[...], preferred_element_type=jnp.float32) + b1_ref[...]
    h = jnp.maximum(h, 0.0)
    h = jnp.dot(h.astype(w_dtype), w2_ref[...],
                preferred_element_type=jnp.float32) + b2_ref[...]
    h = jnp.maximum(h, 0.0)
    h = jnp.dot(h.astype(w_dtype), w3_ref[...],
                preferred_element_type=jnp.float32) + b3_ref[...]
    h = jnp.maximum(h, 0.0)
    o_ref[...] = (jnp.dot(h.astype(w_dtype), w4_ref[...],
                          preferred_element_type=jnp.float32)
                  + b4_ref[...]).astype(o_ref.dtype)


def _select_batch_tile(B, batch_tile, cores_per_chip):
    """Largest tile <= batch_tile that covers B; split only when it pays off."""
    B8 = _round_up(max(B, 1), 8)
    tile = max(8, min(_round_up(batch_tile, 8), B8))
    if (cores_per_chip >= 2 and B >= 1024
            and pl.cdiv(B, tile) < 2 * cores_per_chip):
        # v7x: keep >= 2 grid steps per TensorCore so each core can keep its
        # x/out DMAs double-buffered; never shrink below 256 rows so per-step
        # overhead stays amortized.
        tile = min(B8, max(256, _round_up(pl.cdiv(B, 2 * cores_per_chip), 8)))
    return tile


def value_net_forward(x, params, *, batch_tile=2048, use_bf16=True,
                      out_dtype=None):
    """Fused value_net MLP forward via pallas_call.

    x: (B, input_dim) float32
    params: dict with w1..w4 of shape (in, out) and b1..b4 of shape (1, out)
    Returns (B, output_dim) float32 (PyTorch forward semantics).
    """
    B, input_dim = x.shape
    w1, b1 = params["w1"], params["b1"]
    w2, b2 = params["w2"], params["b2"]
    w3, b3 = params["w3"], params["b3"]
    w4, b4 = params["w4"], params["b4"]
    output_dim = w4.shape[1]

    tile = _select_batch_tile(B, batch_tile, _cores_per_chip())
    grid_m = pl.cdiv(B, tile)

    # Lane-dense output: pad the final layer to a multiple of 128 output
    # features so (non-boundary) stores are unmasked vst.
    n_out = _round_up(output_dim, LANE)
    if n_out != output_dim:
        w4 = jnp.pad(w4, ((0, 0), (0, n_out - output_dim)))
        b4 = jnp.pad(b4, ((0, 0), (0, n_out - output_dim)))

    # Dtypes: bf16 matmul weights (f32 acc on MXU), f32 biases, bf16 output on
    # the fast path (halves writeback).  use_bf16=False keeps a pure-f32 path.
    mm_dtype = jnp.bfloat16 if use_bf16 else jnp.float32
    if out_dtype is None:
        out_dtype = jnp.bfloat16 if use_bf16 else jnp.float32
    w1, w2, w3, w4 = (w.astype(mm_dtype) for w in (w1, w2, w3, w4))
    b1, b2, b3, b4 = (b.astype(jnp.float32) for b in (b1, b2, b3, b4))
    d1, d2, d3 = w1.shape[1], w2.shape[1], w3.shape[1]

    # VMEM budget: double-buffered x/out tiles, resident weights+biases,
    # f32 intermediates plus their matmul-dtype copies.
    w_bytes = jnp.dtype(mm_dtype).itemsize
    o_bytes = jnp.dtype(out_dtype).itemsize
    weight_bytes = (sum(int(w.size) for w in (w1, w2, w3, w4)) * w_bytes
                    + sum(int(b.size) for b in (b1, b2, b3, b4)) * 4)
    vmem_est = (2 * tile * input_dim * x.dtype.itemsize
                + 2 * tile * n_out * o_bytes
                + 2 * weight_bytes
                + tile * (d1 + d2 + d3) * (4 + w_bytes))
    vmem_limit = None
    if vmem_est > 16 * 1024 * 1024:
        vmem_limit = min(int(vmem_est * 2), (_vmem_capacity_bytes() * 3) // 4)

    rows = grid_m * tile
    flops = 2 * rows * (input_dim * d1 + d1 * d2 + d2 * d3 + d3 * n_out)
    bytes_accessed = (B * input_dim * x.dtype.itemsize + weight_bytes
                      + B * n_out * o_bytes)

    row_map = lambda i: (i, 0)
    bcast = lambda i: (0, 0)

    out = pl.pallas_call(
        value_net_kernel,
        out_shape=jax.ShapeDtypeStruct((B, n_out), out_dtype),
        grid=(grid_m,),
        in_specs=[
            pl.BlockSpec((tile, input_dim), row_map),
            pl.BlockSpec(w1.shape, bcast), pl.BlockSpec(b1.shape, bcast),
            pl.BlockSpec(w2.shape, bcast), pl.BlockSpec(b2.shape, bcast),
            pl.BlockSpec(w3.shape, bcast), pl.BlockSpec(b3.shape, bcast),
            pl.BlockSpec(w4.shape, bcast), pl.BlockSpec(b4.shape, bcast),
        ],
        out_specs=pl.BlockSpec((tile, n_out), row_map),
        compiler_params=pltpu.CompilerParams(
            dimension_semantics=("parallel",),
            vmem_limit_bytes=vmem_limit),
        cost_estimate=pl.CostEstimate(
            flops=flops, transcendentals=0, bytes_accessed=bytes_accessed),
    )(x, w1, b1, w2, b2, w3, b3, w4, b4)

    # Slice off the lane padding; return f32 like the PyTorch module.
    return out[:, :output_dim].astype(jnp.float32)


def init_params(key, input_dim, output_dim):
    """Deterministic synthetic init (uniform, PyTorch-Linear-like scale)."""
    dims = [(input_dim, 128), (128, 256), (256, 128), (128, output_dim)]
    params = {}
    for idx, (fan_in, fan_out) in enumerate(dims, start=1):
        key, kw, kb = jax.random.split(key, 3)
        bound = 1.0 / jnp.sqrt(fan_in)
        params[f"w{idx}"] = jax.random.uniform(
            kw, (fan_in, fan_out), jnp.float32, -bound, bound)
        params[f"b{idx}"] = jax.random.uniform(
            kb, (1, fan_out), jnp.float32, -bound, bound)
    return params


def value_net_ref(x, params):
    h = jnp.maximum(x @ params["w1"] + params["b1"], 0.0)
    h = jnp.maximum(h @ params["w2"] + params["b2"], 0.0)
    h = jnp.maximum(h @ params["w3"] + params["b3"], 0.0)
    return h @ params["w4"] + params["b4"]


if __name__ == "__main__":
    key = jax.random.PRNGKey(0)
    input_dim = 32
    output_dim = 4
    batch = 8

    key, kx, kp, kx2 = jax.random.split(key, 4)
    x = jax.random.normal(kx, (batch, input_dim), jnp.float32)
    params = init_params(kp, input_dim, output_dim)
    ref = value_net_ref(x, params)

    # 1) f32 path: tight structural / numerical check.
    out_f32 = jax.block_until_ready(value_net_forward(x, params, use_bf16=False))
    assert out_f32.shape == (batch, output_dim)
    assert out_f32.dtype == jnp.float32
    assert jnp.allclose(out_f32, ref, atol=1e-4, rtol=1e-4)

    # 2) bf16 fast path (default, bf16 writeback): loose tolerance vs f32 ref.
    out_bf16 = jax.block_until_ready(value_net_forward(x, params))
    assert out_bf16.shape == (batch, output_dim)
    assert jnp.allclose(out_bf16, ref, atol=5e-2, rtol=5e-2)

    # 3) ragged batch exercising the cdiv grid with a masked-boundary store
    #    (no wrapper-side padding of x) and a multi-step parallel grid.
    x_big = jax.random.normal(kx2, (300, input_dim), jnp.float32)
    out_big = jax.block_until_ready(
        value_net_forward(x_big, params, batch_tile=128))
    ref_big = value_net_ref(x_big, params)
    assert out_big.shape == (300, output_dim)
    assert jnp.allclose(out_big, ref_big, atol=5e-2, rtol=5e-2)

    print("KERNEL_OK")
</pallas_src>

<mosaic_0001>
module attributes {stable_mosaic.version = 11 : i64} {
  func.func @value_net_kernel(%arg0: i32, %arg1: memref<8x32xf32, #tpu.memory_space<vmem>>, %arg2: memref<32x128xf32, #tpu.memory_space<vmem>>, %arg3: memref<1x128xf32, #tpu.memory_space<vmem>>, %arg4: memref<128x256xf32, #tpu.memory_space<vmem>>, %arg5: memref<1x256xf32, #tpu.memory_space<vmem>>, %arg6: memref<256x128xf32, #tpu.memory_space<vmem>>, %arg7: memref<1x128xf32, #tpu.memory_space<vmem>>, %arg8: memref<128x128xf32, #tpu.memory_space<vmem>>, %arg9: memref<1x128xf32, #tpu.memory_space<vmem>>, %arg10: memref<8x128xf32, #tpu.memory_space<vmem>>) attributes {dimension_semantics = [#tpu.dimension_semantics<parallel>], iteration_bounds = array<i64: 1>, scalar_prefetch = 0 : i64, scratch_operands = 0 : i64, tpu.core_type = #tpu.core_type<tc>, window_params = [{transform_indices = @transform_0, window_bounds = array<i64: 8, 32>}, {pipeline_mode = #tpu.pipeline_mode<synchronous>, transform_indices = @transform_1, window_bounds = array<i64: 32, 128>}, {pipeline_mode = #tpu.pipeline_mode<synchronous>, transform_indices = @transform_2, window_bounds = array<i64: 1, 128>}, {pipeline_mode = #tpu.pipeline_mode<synchronous>, transform_indices = @transform_3, window_bounds = array<i64: 128, 256>}, {pipeline_mode = #tpu.pipeline_mode<synchronous>, transform_indices = @transform_4, window_bounds = array<i64: 1, 256>}, {pipeline_mode = #tpu.pipeline_mode<synchronous>, transform_indices = @transform_5, window_bounds = array<i64: 256, 128>}, {pipeline_mode = #tpu.pipeline_mode<synchronous>, transform_indices = @transform_6, window_bounds = array<i64: 1, 128>}, {pipeline_mode = #tpu.pipeline_mode<synchronous>, transform_indices = @transform_7, window_bounds = array<i64: 128, 128>}, {pipeline_mode = #tpu.pipeline_mode<synchronous>, transform_indices = @transform_8, window_bounds = array<i64: 1, 128>}, {transform_indices = @transform_9, window_bounds = array<i64: 8, 128>}]} {
    %c0 = arith.constant 0 : index
    %c0_0 = arith.constant 0 : index
    %0 = vector.load %arg1[%c0, %c0_0] : memref<8x32xf32, #tpu.memory_space<vmem>>, vector<8x32xf32>
    %c0_1 = arith.constant 0 : index
    %c0_2 = arith.constant 0 : index
    %1 = vector.load %arg2[%c0_1, %c0_2] : memref<32x128xf32, #tpu.memory_space<vmem>>, vector<32x128xf32>
    %cst = arith.constant dense<0.000000e+00> : vector<8x128xf32>
    %2 = tpu.matmul %0, %1, %cst {dimension_numbers = #tpu.dot_dimension_numbers<[1], [0], [0], [1], [0, 0, 1, 1], [], []>} : vector<8x32xf32>, vector<32x128xf32>, vector<8x128xf32> -> vector<8x128xf32>
    %c0_3 = arith.constant 0 : index
    %c0_4 = arith.constant 0 : index
    %3 = vector.load %arg3[%c0_3, %c0_4] : memref<1x128xf32, #tpu.memory_space<vmem>>, vector<1x128xf32>
    %4 = vector.broadcast %3 : vector<1x128xf32> to vector<8x128xf32>
    %5 = arith.addf %2, %4 : vector<8x128xf32>
    %cst_5 = arith.constant 0.000000e+00 : f32
    %6 = vector.broadcast %cst_5 : f32 to vector<8x128xf32>
    %7 = arith.maximumf %5, %6 : vector<8x128xf32>
    %c0_6 = arith.constant 0 : index
    %c0_7 = arith.constant 0 : index
    %8 = vector.load %arg4[%c0_6, %c0_7] : memref<128x256xf32, #tpu.memory_space<vmem>>, vector<128x256xf32>
    %cst_8 = arith.constant dense<0.000000e+00> : vector<8x256xf32>
    %9 = tpu.matmul %7, %8, %cst_8 {dimension_numbers = #tpu.dot_dimension_numbers<[1], [0], [0], [1], [0, 0, 1, 1], [], []>} : vector<8x128xf32>, vector<128x256xf32>, vector<8x256xf32> -> vector<8x256xf32>
    %c0_9 = arith.constant 0 : index
    %c0_10 = arith.constant 0 : index
    %10 = vector.load %arg5[%c0_9, %c0_10] : memref<1x256xf32, #tpu.memory_space<vmem>>, vector<1x256xf32>
    %11 = vector.broadcast %10 : vector<1x256xf32> to vector<8x256xf32>
    %12 = arith.addf %9, %11 : vector<8x256xf32>
    %cst_11 = arith.constant 0.000000e+00 : f32
    %13 = vector.broadcast %cst_11 : f32 to vector<8x256xf32>
    %14 = arith.maximumf %12, %13 : vector<8x256xf32>
    %c0_12 = arith.constant 0 : index
    %c0_13 = arith.constant 0 : index
    %15 = vector.load %arg6[%c0_12, %c0_13] : memref<256x128xf32, #tpu.memory_space<vmem>>, vector<256x128xf32>
    %cst_14 = arith.constant dense<0.000000e+00> : vector<8x128xf32>
    %16 = tpu.matmul %14, %15, %cst_14 {dimension_numbers = #tpu.dot_dimension_numbers<[1], [0], [0], [1], [0, 0, 1, 1], [], []>} : vector<8x256xf32>, vector<256x128xf32>, vector<8x128xf32> -> vector<8x128xf32>
    %c0_15 = arith.constant 0 : index
    %c0_16 = arith.constant 0 : index
    %17 = vector.load %arg7[%c0_15, %c0_16] : memref<1x128xf32, #tpu.memory_space<vmem>>, vector<1x128xf32>
    %18 = vector.broadcast %17 : vector<1x128xf32> to vector<8x128xf32>
    %19 = arith.addf %16, %18 : vector<8x128xf32>
    %cst_17 = arith.constant 0.000000e+00 : f32
    %20 = vector.broadcast %cst_17 : f32 to vector<8x128xf32>
    %21 = arith.maximumf %19, %20 : vector<8x128xf32>
    %c0_18 = arith.constant 0 : index
    %c0_19 = arith.constant 0 : index
    %22 = vector.load %arg8[%c0_18, %c0_19] : memref<128x128xf32, #tpu.memory_space<vmem>>, vector<128x128xf32>
    %cst_20 = arith.constant dense<0.000000e+00> : vector<8x128xf32>
    %23 = tpu.matmul %21, %22, %cst_20 {dimension_numbers = #tpu.dot_dimension_numbers<[1], [0], [0], [1], [0, 0, 1, 1], [], []>} : vector<8x128xf32>, vector<128x128xf32>, vector<8x128xf32> -> vector<8x128xf32>
    %c0_21 = arith.constant 0 : index
    %c0_22 = arith.constant 0 : index
    %24 = vector.load %arg9[%c0_21, %c0_22] : memref<1x128xf32, #tpu.memory_space<vmem>>, vector<1x128xf32>
    %25 = vector.broadcast %24 : vector<1x128xf32> to vector<8x128xf32>
    %26 = arith.addf %23, %25 : vector<8x128xf32>
    %c0_23 = arith.constant 0 : index
    %c0_24 = arith.constant 0 : index
    %27 = vector.load %arg10[%c0_23, %c0_24] : memref<8x128xf32, #tpu.memory_space<vmem>>, vector<8x128xf32>
    tpu.vector_store %arg10[%c0_23, %c0_24], %26 {strides = array<i32>} : memref<8x128xf32, #tpu.memory_space<vmem>>, vector<8x128xf32>,
    return
  }
  func.func @transform_0(%arg0: i32) -> (i32, i32) {
    %c0_i32 = arith.constant 0 : i32
    %c0_i32_0 = arith.constant 0 : i32
    return %arg0, %c0_i32 : i32, i32
  }
  func.func @transform_1(%arg0: i32) -> (i32, i32) {
    %c0_i32 = arith.constant 0 : i32
    %c0_i32_0 = arith.constant 0 : i32
    %c0_i32_1 = arith.constant 0 : i32
    return %c0_i32, %c0_i32_0 : i32, i32
  }
  func.func @transform_2(%arg0: i32) -> (i32, i32) {
    %c0_i32 = arith.constant 0 : i32
    %c0_i32_0 = arith.constant 0 : i32
    %c0_i32_1 = arith.constant 0 : i32
    return %c0_i32, %c0_i32_0 : i32, i32
  }
  func.func @transform_3(%arg0: i32) -> (i32, i32) {
    %c0_i32 = arith.constant 0 : i32
    %c0_i32_0 = arith.constant 0 : i32
    %c0_i32_1 = arith.constant 0 : i32
    return %c0_i32, %c0_i32_0 : i32, i32
  }
  func.func @transform_4(%arg0: i32) -> (i32, i32) {
    %c0_i32 = arith.constant 0 : i32
    %c0_i32_0 = arith.constant 0 : i32
    %c0_i32_1 = arith.constant 0 : i32
    return %c0_i32, %c0_i32_0 : i32, i32
  }
  func.func @transform_5(%arg0: i32) -> (i32, i32) {
    %c0_i32 = arith.constant 0 : i32
    %c0_i32_0 = arith.constant 0 : i32
    %c0_i32_1 = arith.constant 0 : i32
    return %c0_i32, %c0_i32_0 : i32, i32
  }
  func.func @transform_6(%arg0: i32) -> (i32, i32) {
    %c0_i32 = arith.constant 0 : i32
    %c0_i32_0 = arith.constant 0 : i32
    %c0_i32_1 = arith.constant 0 : i32
    return %c0_i32, %c0_i32_0 : i32, i32
  }
  func.func @transform_7(%arg0: i32) -> (i32, i32) {
    %c0_i32 = arith.constant 0 : i32
    %c0_i32_0 = arith.constant 0 : i32
    %c0_i32_1 = arith.constant 0 : i32
    return %c0_i32, %c0_i32_0 : i32, i32
  }
  func.func @transform_8(%arg0: i32) -> (i32, i32) {
    %c0_i32 = arith.constant 0 : i32
    %c0_i32_0 = arith.constant 0 : i32
    %c0_i32_1 = arith.constant 0 : i32
    return %c0_i32, %c0_i32_0 : i32, i32
  }
  func.func @transform_9(%arg0: i32) -> (i32, i32) {
    %c0_i32 = arith.constant 0 : i32
    %c0_i32_0 = arith.constant 0 : i32
    return %arg0, %c0_i32 : i32, i32
  }
}

</mosaic_0001>

<bundles_post_ra>
// kernel: tpu_custom_call.1
= control target key start
LH: loop header
LB: loop body
LE: loop exit
PB: predicated region body
PF: predicated region fallthrough
CT: control target
= control target key end

     0   :  { %14 = vsyncpa [#allocation3], 0  ;;  %s1049_s0 = inlined_call_operand.hbm [shape: f32[8,32], index: 0, kind: input, shape index: {}]   ;;  %s1050_s1 = inlined_call_operand.hbm [shape: f32[32,128], index: 1, kind: input, shape index: {}]   ;;  %s1051_s2 = inlined_call_operand.vmem [shape: f32[1,128], index: 2, kind: input, shape index: {}]   ;;  %s1052_s3 = inlined_call_operand.hbm [shape: f32[128,256], index: 3, kind: input, shape index: {}]   ;;  %s1053_s4 = inlined_call_operand.vmem [shape: f32[1,256], index: 4, kind: input, shape index: {}]   ;;  %s1054_s5 = inlined_call_operand.hbm [shape: f32[256,128], index: 5, kind: input, shape index: {}]   ;;  %s1055_s6 = inlined_call_operand.vmem [shape: f32[1,128], index: 6, kind: input, shape index: {}]   ;;  %s1056_s7 = inlined_call_operand.hbm [shape: f32[128,128], index: 7, kind: input, shape index: {}]   ;;  %s1057_s8 = inlined_call_operand.vmem [shape: f32[1,128], index: 8, kind: input, shape index: {}]   ;;  %s1058_s9 = inlined_call_operand.hbm [shape: f32[8,128], index: 9, kind: output, shape index: {}]  }
   0x1   :  { %15 = vsyncpa [#allocation6], 0 }
   0x2   :  { %16 = vsyncpa [#allocation9], 0 }
   0x3   :  { %17 = vsyncpa [#allocation4], 0  ;;  %s878_s30 = smov [#allocation5]   ;;  %s738_s13 = scalar_lea.hbm %s1050_s1, 512 }
   0x4   :  { %s33_s10 = sshll.u32 %s878_s30, 4  ;;  %p739_p0 = scmp.ne.s32.totalorder %s1050_s1, %s738_s13  ;;  %s34_s10 = int_to_ptr.vmem [resolvable:$true] %s33_s10 }
   0x5   :  { %p742_p1 = scmp.lt.u32.totalorder %s738_s13, %s1050_s1 }
   0x7   :  { %p744_p2 = pnand %p742_p1, %p739_p0 }
   0x9   :  { %747 = shalt.err (!%p744_p2)
}
   0xa   :  { %s748_s18 = scalar_lea.vmem %s34_s10, 512  ;;  %p753_p4 = scmp.lt.s32.totalorder %s34_s10, %s34_s10 }
   0xb   :  { %p749_p3 = scmp.ne.s32.totalorder %s34_s10, %s748_s18  ;;  %p754_p5 = scmp.lt.s32.totalorder %s748_s18, %s748_s18 }
   0xd   :  { %p755_p6 = por %p754_p5, %p753_p4 }
   0xf   :  { %p756_p7 = pnand %p755_p6, %p749_p3 }
  0x11   :  { %759 = shalt.err (!%p756_p7)
}
  0x12   :  { %s879_s19 = smov 128   ;;  %s880_s20 = smov 8  }
  0x13   :  { %39 = dma.hbm_to_vmem [thread:$0]  %s1050_s1, 512, %s34_s10, [#allocation6], %s879_s19, %s879_s19, %s880_s20  }
  0x14   :  { %s881_s23 = smov [#allocation8]   ;;  %s882_s25 = smov [#allocation2]  }
  0x15   :  { %s61_s24 = sshll.u32 %s881_s23, 4  ;;  %s24_s26 = sshll.u32 %s882_s25, 4  ;;  %s62_s24 = int_to_ptr.vmem [resolvable:$true] %s61_s24  ;;  %s25_s26 = int_to_ptr.vmem [resolvable:$true] %s24_s26 }
  0x16   :  { %s760_s29 = scalar_lea.hbm %s1054_s5, 4096 }
  0x17   :  { %p761_p8 = scmp.ne.s32.totalorder %s1054_s5, %s760_s29  ;;  %p764_p9 = scmp.lt.u32.totalorder %s760_s29, %s1054_s5 }
  0x19   :  { %p766_p10 = pnand %p764_p9, %p761_p8 }
  0x1b   :  { %769 = shalt.err (!%p766_p10)
}
  0x1c   :  { %s770_s1 = scalar_lea.vmem %s62_s24, 4096  ;;  %p775_p12 = scmp.lt.s32.totalorder %s62_s24, %s62_s24 }
  0x1d   :  { %p771_p11 = scmp.ne.s32.totalorder %s62_s24, %s770_s1  ;;  %p776_p13 = scmp.lt.s32.totalorder %s770_s1, %s770_s1 }
  0x1f   :  { %p777_p0 = por %p776_p13, %p775_p12 }
  0x21   :  { %p778_p1 = pnand %p777_p0, %p771_p11 }
  0x23   :  { %781 = shalt.err (!%p778_p1)
}
  0x24   :  { %67 = dma.hbm_to_vmem [thread:$0]  %s1054_s5, 4096, %s62_s24, [#allocation9], %s879_s19, %s879_s19, %s880_s20  }
  0x25   :  { %s782_s17 = scalar_lea.hbm %s1049_s0, 128 }
  0x26   :  { %p783_p2 = scmp.ne.s32.totalorder %s1049_s0, %s782_s17  ;;  %p786_p3 = scmp.lt.u32.totalorder %s782_s17, %s1049_s0 }
  0x28   :  { %p788_p4 = pnand %p786_p3, %p783_p2 }
  0x2a   :  { %791 = shalt.err (!%p788_p4)
}
  0x2b   :  { %s792_s25 = scalar_lea.vmem %s25_s26, 128  ;;  %p797_p6 = scmp.lt.s32.totalorder %s25_s26, %s25_s26 }
  0x2c   :  { %p793_p5 = scmp.ne.s32.totalorder %s25_s26, %s792_s25  ;;  %p798_p7 = scmp.lt.s32.totalorder %s792_s25, %s792_s25 }
  0x2e   :  { %p799_p8 = por %p798_p7, %p797_p6 }
  0x30   :  { %p800_p9 = pnand %p799_p8, %p793_p5 }
  0x32   :  { %803 = shalt.err (!%p800_p9)
}
  0x33   :  { %27 = dma.hbm_to_vmem [thread:$0]  %s1049_s0, 128, %s25_s26, [#allocation3]  }
  0x34   :  { %s883_s27 = smov [#allocation7]   ;;  %s804_s11 = scalar_lea.hbm %s1052_s3, 4096 }
  0x35   :  { %s47_s28 = sshll.u32 %s883_s27, 4  ;;  %p805_p10 = scmp.ne.s32.totalorder %s1052_s3, %s804_s11  ;;  %s48_s28 = int_to_ptr.vmem [resolvable:$true] %s47_s28 }
  0x36   :  { %p808_p11 = scmp.lt.u32.totalorder %s804_s11, %s1052_s3 }
  0x38   :  { %p810_p12 = pnand %p808_p11, %p805_p10 }
  0x3a   :  { %813 = shalt.err (!%p810_p12)
}
  0x3b   :  { %s814_s14 = scalar_lea.vmem %s48_s28, 4096  ;;  %p819_p0 = scmp.lt.s32.totalorder %s48_s28, %s48_s28 }
  0x3c   :  { %p815_p13 = scmp.ne.s32.totalorder %s48_s28, %s814_s14  ;;  %p820_p1 = scmp.lt.s32.totalorder %s814_s14, %s814_s14 }
  0x3e   :  { %p821_p2 = por %p820_p1, %p819_p0 }
  0x40   :  { %p822_p3 = pnand %p821_p2, %p815_p13 }
  0x42   :  { %825 = shalt.err (!%p822_p3)
}
  0x43   :  { %s884_s0 = smov 256   ;;  %s885_s26 = smov 16  }
  0x44   :  { %53 = dma.hbm_to_vmem [thread:$0]  %s1052_s3, 4096, %s48_s28, [#allocation6], %s884_s0, %s884_s0, %s885_s26  }
  0x45   :  { %s886_s17 = smov [#allocation10]   ;;  %s826_s23 = scalar_lea.hbm %s1056_s7, 2048 }
  0x46   :  { %s75_s18 = sshll.u32 %s886_s17, 4  ;;  %p827_p4 = scmp.ne.s32.totalorder %s1056_s7, %s826_s23  ;;  %s76_s18 = int_to_ptr.vmem [resolvable:$true] %s75_s18 }
  0x47   :  { %p830_p5 = scmp.lt.u32.totalorder %s826_s23, %s1056_s7 }
  0x49   :  { %p832_p6 = pnand %p830_p5, %p827_p4 }
  0x4b   :  { %835 = shalt.err (!%p832_p6)
}
  0x4c   :  { %s836_s29 = scalar_lea.vmem %s76_s18, 2048  ;;  %p841_p8 = scmp.lt.s32.totalorder %s76_s18, %s76_s18 }
  0x4d   :  { %p837_p7 = scmp.ne.s32.totalorder %s76_s18, %s836_s29  ;;  %p842_p9 = scmp.lt.s32.totalorder %s836_s29, %s836_s29 }
  0x4f   :  { %p843_p10 = por %p842_p9, %p841_p8 }
  0x51   :  { %p844_p11 = pnand %p843_p10, %p837_p7 }
  0x53   :  { %847 = shalt.err (!%p844_p11)
}
  0x54   :  { %81 = dma.hbm_to_vmem [thread:$0]  %s1056_s7, 2048, %s76_s18, [#allocation9], %s879_s19, %s879_s19, %s880_s20  }
  0x55   :  { %870 = dma.done.wait [#allocation3], 128  }
  0x56   :  { %871 = vsyncadd [#allocation3], 4294967168 }
  0x57   :  { %872 = dma.done.wait [#allocation6], 4608  }
  0x58   :  { %873 = vsyncadd [#allocation6], 4294962688 }
  0x59   :  { %874 = dma.done.wait [#allocation9], 6144  }
  0x5a   :  { %875 = vsyncadd [#allocation9], 4294961152  ;;  %v887_v0 = vmov 0.0|0.0   ;;  %vm888_vm0 = vmmov 0   ;;  %v889_v1 = vmov 0.0   ;;  %v100_v2 = vld [vmem:[#allocation5] sm:$0xff] }
  0x5b   :  { %631 = vmatprep.subr.bf16.mxu0 %v887_v0  ;;  %593 = vmatprep.mubr.msk.f32.mxu0 %vm888_vm0, %v889_v1  ;;  %v101_v3 = vld [vmem:[#allocation5 + $0x8] sm:$0xff]  ;;  %v102_v4 = vld [vmem:[#allocation5 + $0x10] sm:$0xff]  ;;  %v103_v6 = vld [vmem:[#allocation5 + $0x18] sm:$0xff]  ;;  %vm111_vm1 = vcmask 261120   ;;  %s890_s13 = smov [#allocation11]  }
  0x5c   :  { %294 = vmatprep.mubr.f32.mxu1 %v889_v1  ;;  %v632_v5 = vpack.c.bf16 %v101_v3, %v100_v2  ;;  %v187_v7 = vld [vmem:[#allocation7 + $0x8] sm:$0xff]  ;;  %v189_v8 = vld [vmem:[#allocation7 + $0x18] sm:$0xff]  ;;  %v186_v9 = vld [vmem:[#allocation7] sm:$0xff]  ;;  %v635_v11 = vpack.c.bf16 %v103_v6, %v102_v4  ;;  %s513_s1 = sshll.u32 %s890_s13, 4  ;;  %s514_s1 = int_to_ptr.vmem [resolvable:$true] %s513_s1 }
  0x5d   :  { %v188_v10 = vld [vmem:[#allocation7 + $0x10] sm:$0xff]  ;;  %v637_v12 = vpack.c.bf16 %v189_v8, %v187_v7  ;;  %v191_v14 = vld [vmem:[#allocation7 + $0x28] sm:$0xff]  ;;  %v193_v15 = vld [vmem:[#allocation7 + $0x38] sm:$0xff]  ;;  %s848_s10 = scalar_lea.vmem %s514_s1, 128  ;;  %p853_p13 = scmp.lt.s32.totalorder %s514_s1, %s514_s1 }
  0x5e   :  { %633 = vmatpush3.bf16.msra.mxu0 %v632_v5  ;;  %v639_v13 = vpack.c.bf16 %v188_v10, %v186_v9  ;;  %v190_v16 = vld [vmem:[#allocation7 + $0x20] sm:$0xff]  ;;  %v641_v17 = vpack.c.bf16 %v193_v15, %v191_v14  ;;  %v192_v18 = vld [vmem:[#allocation7 + $0x30] sm:$0xff]  ;;  %v195_v19 = vld [vmem:[#allocation7 + $0x48] sm:$0xff]  ;;  %p849_p12 = scmp.ne.s32.totalorder %s514_s1, %s848_s10  ;;  %p854_p0 = scmp.lt.s32.totalorder %s848_s10, %s848_s10 }
  0x5f   :  { %634 = vmatprep.subr.bf16.mxu0 %v887_v0  ;;  %v197_v20 = vld [vmem:[#allocation7 + $0x58] sm:$0xff]  ;;  %638 = vmatprep.subr.bf16.mxu1 %v637_v12  ;;  %v643_v21 = vpack.c.bf16 %v192_v18, %v190_v16  ;;  %v194_v24 = vld [vmem:[#allocation7 + $0x40] sm:$0xff]  ;;  %v196_v25 = vld [vmem:[#allocation7 + $0x50] sm:$0xff] }
  0x60   :  { %640 = vmatpush1.bf16.msra.mxu1 %v639_v13  ;;  %v99_v22 = vld [vmem:[#allocation2] sm:$0xff]  ;;  %v645_v23 = vpack.c.bf16 %v197_v20, %v195_v19  ;;  %v199_v26 = vld [vmem:[#allocation7 + $0x68] sm:$0xff]  ;;  %v647_v28 = vpack.c.bf16 %v196_v25, %v194_v24  ;;  %v198_v30 = vld [vmem:[#allocation7 + $0x60] sm:$0xff]  ;;  %p855_p1 = por %p854_p0, %p853_p13 }
  0x61   :  { %642 = vmatprep.subr.bf16.mxu1 %v641_v17  ;;  %v201_v27 = vld [vmem:[#allocation7 + $0x78] sm:$0xff]  ;;  %v200_v31 = vld [vmem:[#allocation7 + $0x70] sm:$0xff]  ;;  %v203_v32 = vld [vmem:[#allocation7 + $0x88] sm:$0xff] }
  0x62   :  { %636 = vmatpush3.bf16.msra.mxu0 %v635_v11  ;;  %v649_v29 = vpack.c.bf16 %v201_v27, %v199_v26  ;;  %v205_v33 = vld [vmem:[#allocation7 + $0x98] sm:$0xff]  ;;  %v651_v34 = vpack.c.bf16 %v200_v31, %v198_v30  ;;  %v202_v36 = vld [vmem:[#allocation7 + $0x80] sm:$0xff]  ;;  %v204_v37 = vld [vmem:[#allocation7 + $0x90] sm:$0xff]  ;;  %p856_p2 = pnand %p855_p1, %p849_p12 }
  0x63   :  { %v653_v35 = vpack.c.bf16 %v205_v33, %v203_v32  ;;  %v207_v38 = vld [vmem:[#allocation7 + $0xa8] sm:$0xff]  ;;  %v209_v39 = vld [vmem:[#allocation7 + $0xb8] sm:$0xff]  ;;  %v655_v40 = vpack.c.bf16 %v204_v37, %v202_v36  ;;  %v206_v42 = vld [vmem:[#allocation7 + $0xa0] sm:$0xff] }
  0x64   :  { %644 = vmatpush1.bf16.msra.mxu1 %v643_v21  ;;  %v657_v41 = vpack.c.bf16 %v209_v39, %v207_v38  ;;  %v208_v43 = vld [vmem:[#allocation7 + $0xb0] sm:$0xff]  ;;  %v211_v44 = vld [vmem:[#allocation7 + $0xc8] sm:$0xff]  ;;  %v213_v45 = vld [vmem:[#allocation7 + $0xd8] sm:$0xff] }
  0x65   :  { %594 = vmatmul.mubr.msk.f32.vlgmr.msra.gmra.mrb[0].mxu0 %vm111_vm1, %v99_v22  ;;  %646 = vmatprep.subr.bf16.mxu1 %v645_v23  ;;  %v659_v46 = vpack.c.bf16 %v208_v43, %v206_v42  ;;  %v661_v47 = vpack.c.bf16 %v213_v45, %v211_v44  ;;  %v210_v48 = vld [vmem:[#allocation7 + $0xc0] sm:$0xff]  ;;  %v212_v49 = vld [vmem:[#allocation7 + $0xd0] sm:$0xff]  ;;  %v215_v51 = vld [vmem:[#allocation7 + $0xe8] sm:$0xff] }
  0x66   :  { %v663_v50 = vpack.c.bf16 %v212_v49, %v210_v48  ;;  %v217_v52 = vld [vmem:[#allocation7 + $0xf8] sm:$0xff]  ;;  %v214_v54 = vld [vmem:[#allocation7 + $0xe0] sm:$0xff]  ;;  %v216_v55 = vld [vmem:[#allocation7 + $0xf0] sm:$0xff] }
  0x67   :  { %v665_v53 = vpack.c.bf16 %v217_v52, %v215_v51  ;;  %v667_v56 = vpack.c.bf16 %v216_v55, %v214_v54  ;;  %v319_v57 = vld [vmem:[#allocation8 + $0x80] sm:$0xff]  ;;  %v320_v58 = vld [vmem:[#allocation8 + $0x88] sm:$0xff]  ;;  %v321_v62 = vld [vmem:[#allocation8 + $0x90] sm:$0xff] }
  0x68   :  { %648 = vmatpush1.bf16.msra.mxu1 %v647_v28  ;;  %v303_v59 = vld [vmem:[#allocation8] sm:$0xff]  ;;  %v669_v60 = vpack.c.bf16 %v320_v58, %v319_v57  ;;  %v304_v61 = vld [vmem:[#allocation8 + $0x8] sm:$0xff]  ;;  %v322_v63 = vld [vmem:[#allocation8 + $0x98] sm:$0xff] }
  0x69   :  { %650 = vmatprep.subr.bf16.mxu1 %v649_v29  ;;  %v671_v2 = vpack.c.bf16 %v304_v61, %v303_v59  ;;  %v673_v3 = vpack.c.bf16 %v322_v63, %v321_v62  ;;  %v305_v4 = vld [vmem:[#allocation8 + $0x10] sm:$0xff]  ;;  %v306_v5 = vld [vmem:[#allocation8 + $0x18] sm:$0xff]  ;;  %v323_v6 = vld [vmem:[#allocation8 + $0xa0] sm:$0xff] }
  0x6a   :  { %670 = vmatprep.subr.bf16.mxu0 %v669_v60  ;;  %v324_v7 = vld [vmem:[#allocation8 + $0xa8] sm:$0xff]  ;;  %v675_v8 = vpack.c.bf16 %v306_v5, %v305_v4  ;;  %v307_v10 = vld [vmem:[#allocation8 + $0x20] sm:$0xff]  ;;  %v325_v12 = vld [vmem:[#allocation8 + $0xb0] sm:$0xff] }
  0x6b   :  { %672 = vmatpush3.bf16.msra.mxu0 %v671_v2  ;;  %v677_v9 = vpack.c.bf16 %v324_v7, %v323_v6  ;;  %v308_v11 = vld [vmem:[#allocation8 + $0x28] sm:$0xff]  ;;  %v326_v13 = vld [vmem:[#allocation8 + $0xb8] sm:$0xff]  ;;  %v309_v16 = vld [vmem:[#allocation8 + $0x30] sm:$0xff] }
  0x6c   :  { %652 = vmatpush1.bf16.msra.mxu1 %v651_v34  ;;  %674 = vmatprep.subr.bf16.mxu0 %v673_v3  ;;  %v679_v14 = vpack.c.bf16 %v308_v11, %v307_v10  ;;  %v681_v15 = vpack.c.bf16 %v326_v13, %v325_v12  ;;  %v310_v17 = vld [vmem:[#allocation8 + $0x38] sm:$0xff]  ;;  %v327_v18 = vld [vmem:[#allocation8 + $0xc0] sm:$0xff]  ;;  %v328_v19 = vld [vmem:[#allocation8 + $0xc8] sm:$0xff]  ;;  %v220_v3 = vlaneseq }
  0x6d   :  { %654 = vmatprep.subr.bf16.mxu1 %v653_v35  ;;  %v683_v20 = vpack.c.bf16 %v310_v17, %v309_v16  ;;  %v685_v21 = vpack.c.bf16 %v328_v19, %v327_v18  ;;  %v311_v22 = vld [vmem:[#allocation8 + $0x40] sm:$0xff]  ;;  %v312_v23 = vld [vmem:[#allocation8 + $0x48] sm:$0xff]  ;;  %v329_v24 = vld [vmem:[#allocation8 + $0xd0] sm:$0xff] }
  0x6e   :  { %v330_v25 = vld [vmem:[#allocation8 + $0xd8] sm:$0xff]  ;;  %v687_v26 = vpack.c.bf16 %v312_v23, %v311_v22  ;;  %v313_v28 = vld [vmem:[#allocation8 + $0x50] sm:$0xff]  ;;  %v331_v30 = vld [vmem:[#allocation8 + $0xe0] sm:$0xff]  ;;  %v221_v4 = vshrl.u32 %v220_v3, 7 }
  0x6f   :  { %676 = vmatpush3.bf16.msra.mxu0 %v675_v8  ;;  %v689_v27 = vpack.c.bf16 %v330_v25, %v329_v24  ;;  %v314_v29 = vld [vmem:[#allocation8 + $0x58] sm:$0xff]  ;;  %v332_v31 = vld [vmem:[#allocation8 + $0xe8] sm:$0xff]  ;;  %v315_v39 = vld [vmem:[#allocation8 + $0x60] sm:$0xff] }
  0x70   :  { %656 = vmatpush1.bf16.msra.mxu1 %v655_v40  ;;  %678 = vmatprep.subr.bf16.mxu0 %v677_v9  ;;  %v691_v32 = vpack.c.bf16 %v314_v29, %v313_v28  ;;  %v693_v33 = vpack.c.bf16 %v332_v31, %v331_v30  ;;  %v524_v34 = vld [vmem:[%s1051_s2] ss:$0 sm:$0xff]  ;;  %v316_v40 = vld [vmem:[#allocation8 + $0x68] sm:$0xff]  ;;  %v333_v42 = vld [vmem:[#allocation8 + $0xf0] sm:$0xff]  ;;  %v222_v5 = vsub.s32 0, %v221_v4  ;;  %v226_v7 = vsub.s32 1, %v221_v4 }
  0x71   :  { %658 = vmatprep.subr.bf16.mxu1 %v657_v41  ;;  %v695_v41 = vpack.c.bf16 %v316_v40, %v315_v39  ;;  %v334_v43 = vld [vmem:[#allocation8 + $0xf8] sm:$0xff]  ;;  %v317_v45 = vld [vmem:[#allocation8 + $0x70] sm:$0xff]  ;;  %v413_v48 = vld [vmem:[#allocation10] sm:$0xff] }
  0x72   :  { %v697_v44 = vpack.c.bf16 %v334_v43, %v333_v42  ;;  %v414_v49 = vld [vmem:[#allocation10 + $0x8] sm:$0xff]  ;;  %v416_v52 = vld [vmem:[#allocation10 + $0x18] sm:$0xff]  ;;  %v421_v59 = vld [vmem:[#allocation10 + $0x40] sm:$0xff] }
  0x73   :  { %680 = vmatpush3.bf16.msra.mxu0 %v679_v14  ;;  %v702_v51 = vpack.c.bf16 %v414_v49, %v413_v48  ;;  %v418_v54 = vld [vmem:[#allocation10 + $0x28] sm:$0xff]  ;;  %v420_v57 = vld [vmem:[#allocation10 + $0x38] sm:$0xff]  ;;  %v423_v62 = vld [vmem:[#allocation10 + $0x50] sm:$0xff] }
  0x74   :  { %660 = vmatpush1.bf16.msra.mxu1 %v659_v46  ;;  %682 = vmatprep.subr.bf16.mxu0 %v681_v15  ;;  %v318_v46 = vld [vmem:[#allocation8 + $0x78] sm:$0xff]  ;;  %v422_v60 = vld [vmem:[#allocation10 + $0x48] sm:$0xff]  ;;  %v425_v16 = vld [vmem:[#allocation10 + $0x60] sm:$0xff] }
  0x75   :  { %662 = vmatprep.subr.bf16.mxu1 %v661_v47  ;;  %v699_v47 = vpack.c.bf16 %v318_v46, %v317_v45  ;;  %v714_v61 = vpack.c.bf16 %v422_v60, %v421_v59  ;;  %v424_v63 = vld [vmem:[#allocation10 + $0x58] sm:$0xff]  ;;  %v426_v17 = vld [vmem:[#allocation10 + $0x68] sm:$0xff]  ;;  %v427_v19 = vld [vmem:[#allocation10 + $0x70] sm:$0xff] }
  0x76   :  { %v717_v2 = vpack.c.bf16 %v424_v63, %v423_v62  ;;  %v218_v6 = vld [vmem:[%s1053_s4] sm:$0x3]  ;;  %v720_v18 = vpack.c.bf16 %v426_v17, %v425_v16 }
  0x77   :  { %684 = vmatpush3.bf16.msra.mxu0 %v683_v20  ;;  %v223_v8 = vrot.slane %v218_v6, %v222_v5  ;;  %v227_v9 = vrot.slane %v218_v6, %v226_v7  ;;  %v428_v20 = vld [vmem:[#allocation10 + $0x78] sm:$0xff] }
  0x78   :  { %664 = vmatpush1.bf16.msra.mxu1 %v663_v50  ;;  %686 = vmatprep.subr.bf16.mxu0 %v685_v21  ;;  %v415_v50 = vld [vmem:[#allocation10 + $0x10] sm:$0xff]  ;;  %v723_v21 = vpack.c.bf16 %v428_v20, %v427_v19  ;;  %v526_v23 = vld [vmem:[%s1055_s6] ss:$0 sm:$0xff] }
  0x79   :  { %666 = vmatprep.subr.bf16.mxu1 %v665_v53  ;;  %v705_v53 = vpack.c.bf16 %v416_v52, %v415_v50  ;;  %v527_v28 = vld [vmem:[%s1057_s8] ss:$0 sm:$0xff] }
  0x7b   :  { %688 = vmatpush3.bf16.msra.mxu0 %v687_v26 }
  0x7c   :  { %668 = vmatpush1.bf16.msra.mxu1 %v667_v56  ;;  %690 = vmatprep.subr.bf16.mxu0 %v689_v27  ;;  %v419_v56 = vld [vmem:[#allocation10 + $0x30] sm:$0xff] }
  0x7d   :  { %701 = vmatprep.subr.bf16.mxu1 %v887_v0  ;;  %v711_v58 = vpack.c.bf16 %v420_v57, %v419_v56 }
  0x7f   :  { %692 = vmatpush3.bf16.msra.mxu0 %v691_v32 }
  0x80   :  { %694 = vmatprep.subr.bf16.mxu0 %v693_v33 }
  0x83   :  { %696 = vmatpush3.bf16.msra.mxu0 %v695_v41 }
  0x84   :  { %698 = vmatprep.subr.bf16.mxu0 %v697_v44 }
  0x87   :  { %700 = vmatpush3.bf16.msra.mxu0 %v699_v47 }
 0x138   :  { %v181_v35 = vpop.f32.mrb[0].mxu0 }
 0x139   :  { %v182_v36 = vadd.f32 %v524_v34, %v181_v35  ;;  %v595_v37 = vpop.f32.mrb[1].mxu0 }
 0x13b   :  { %v185_v38 = vmax.f32 %v182_v36, 0.0 }
 0x13d   :  { %295 = vmatmul.mubr.f32.vlgmr.msra.gmra.mrb[0].mxu1 %v185_v38 }
 0x13e   :  { %628 = vmatprep.mubr.msk.f32.mxu1 %vm888_vm0, %v889_v1  ;;  %703 = vmatpush3.bf16.msra.mxu1 %v702_v51  ;;  %v417_v1 = vld [vmem:[#allocation10 + $0x20] sm:$0xff] }
 0x13f   :  { %704 = vmatprep.subr.bf16.mxu1 %v887_v0  ;;  %v708_v55 = vpack.c.bf16 %v418_v54, %v417_v1 }
 0x142   :  { %706 = vmatpush3.bf16.msra.mxu1 %v705_v53 }
 0x143   :  { %707 = vmatprep.subr.bf16.mxu1 %v887_v0 }
 0x146   :  { %709 = vmatpush3.bf16.msra.mxu1 %v708_v55 }
 0x147   :  { %710 = vmatprep.subr.bf16.mxu1 %v887_v0 }
 0x14a   :  { %712 = vmatpush3.bf16.msra.mxu1 %v711_v58 }
 0x14b   :  { %713 = vmatprep.subr.bf16.mxu1 %v887_v0 }
 0x14e   :  { %715 = vmatpush3.bf16.msra.mxu1 %v714_v61 }
 0x14f   :  { %716 = vmatprep.subr.bf16.mxu1 %v887_v0 }
 0x152   :  { %718 = vmatpush3.bf16.msra.mxu1 %v717_v2 }
 0x153   :  { %719 = vmatprep.subr.bf16.mxu1 %v887_v0 }
 0x156   :  { %721 = vmatpush3.bf16.msra.mxu1 %v720_v18 }
 0x157   :  { %722 = vmatprep.subr.bf16.mxu1 %v887_v0 }
 0x15a   :  { %724 = vmatpush3.bf16.msra.mxu1 %v723_v21 }
 0x210   :  { %v296_v10 = vpop.f32.mrb[0].mxu1 }
 0x211   :  { %v297_v11 = vadd.f32 %v296_v10, %v223_v8  ;;  %v298_v12 = vpop.f32.mrb[1].mxu1 }
 0x212   :  { %v299_v13 = vadd.f32 %v298_v12, %v227_v9 }
 0x213   :  { %v301_v15 = vmax.f32 %v297_v11, 0.0 }
 0x214   :  { %v302_v14 = vmax.f32 %v299_v13, 0.0 }
 0x216   :  { %406 = vmatprep.mubr.f32.mxu0 %v302_v14 }
 0x217   :  { %407 = vmatmul.mubr.f32.vlgmr.msra.gmra.mrb[2].mxu0 %v301_v15 }
 0x2ea   :  { %v565_v22 = vpop.f32.mrb[2].mxu0 }
 0x2eb   :  { %v566_v24 = vpop.f32.mrb[3].mxu0 }
 0x2ec   :  { %v567_v25 = vadd.f32 %v566_v24, %v565_v22 }
 0x2ee   :  { %v409_v26 = vadd.f32 %v567_v25, %v526_v23 }
 0x2f0   :  { %v412_v27 = vmax.f32 %v409_v26, 0.0 }
 0x2f2   :  { %629 = vmatmul.mubr.f32.vlgmr.msra.gmra.mrb[2].mxu1 %v412_v27 }
 0x3c5   :  { %v502_v0 = vpop.f32.mrb[2].mxu1 }
 0x3c6   :  { %v503_v29 = vadd.f32 %v527_v28, %v502_v0  ;;  %v630_v30 = vpop.f32.mrb[3].mxu1 }
 0x3c8   :  { %506 = vst [vmem:[#allocation11] sm:$0xff] %v503_v29 }
 0x3c9   :  { %859 = shalt.err (!%p856_p2)
}
 0x3ca   :  { %s860_s0 = scalar_lea.hbm %s1058_s9, 128 }
 0x3cb   :  { %p861_p3 = scmp.ne.s32.totalorder %s1058_s9, %s860_s0  ;;  %p864_p4 = scmp.lt.u32.totalorder %s860_s0, %s1058_s9 }
 0x3cd   :  { %p866_p5 = pnand %p864_p4, %p861_p3 }
 0x3cf   :  { %869 = shalt.err (!%p866_p5)
}
 0x3d0   :  { %516 = dma.vmem_to_hbm [thread:$0]  %s514_s1, 128, %s1058_s9, [#allocation4]  }
 0x3d1   :  { %876 = dma.done.wait [#allocation4], 128  }
 0x3d2   :  { %877 = vsyncadd [#allocation4], 4294967168 }
 0x3d3   :  { %520 = vsyncpa [#allocation3], 1 }
 0x3d4   :  { %521 = vsyncpa [#allocation6], 1 }
 0x3d5   :  { %522 = vsyncpa [#allocation9], 1 }
 0x3d6   :  { %523 = vsyncpa [#allocation4], 1 }

</bundles_post_ra>
